<compile_context>
chip_gen: v7x
topology: tpu7x:2x2x1
jax: 0.10.0
libtpu: 0.0.40
codegen_flags: <defaults>
</compile_context>

<pallas_src>
import functools

import jax
import jax.numpy as jnp
from jax.experimental import pallas as pl
from jax.experimental.pallas import tpu as pltpu


def mixer_head_kernel(x_ref, w_conv_ref, w_blk_ref, bias_ref, o_ref):
    """One grid step handles Btile batch elements.

    x_ref:      (L, Btile*D)        bf16  token axis on sublanes, batch*feature on lanes
    w_conv_ref: (L, L)              bf16  masked/softmaxed conv weight (precomputed)
    w_blk_ref:  (Btile*D, Btile*D)  bf16  block-diagonal out-proj weight (W_sum repeated)
    bias_ref:   (L, Btile*D)        f32   folded conv+out biases, pre-tiled per batch
    o_ref:      (L, Btile*D)              output slab (lane-dense store)
    """
    # Token-mixing conv (Conv1d kernel_size=1) as one MXU matmul over L.
    y = jnp.dot(w_conv_ref[...], x_ref[...],
                preferred_element_type=jnp.float32)           # (L, Btile*D) f32
    # Out-projection: per-batch (L, D) @ (D, D) realised as one lane-aligned
    # matmul against a block-diagonal weight (no in-kernel reshape/transpose).
    out = jnp.dot(y.astype(w_blk_ref.dtype), w_blk_ref[...],
                  preferred_element_type=jnp.float32)         # (L, Btile*D) f32
    o_ref[...] = (out + bias_ref[...]).astype(o_ref.dtype)


def _pick_btile(B, D):
    """Largest divisor of B giving a lane-dense (multiple-of-128) block width,
    preferring to keep >= 2 grid steps (megacore on v7x) and a modest block."""
    cands = [t for t in range(1, B + 1) if B % t == 0 and (t * D) % 128 == 0]
    if not cands:
        return B  # full-array block (always a legal block shape)
    good = [t for t in cands if B // t >= 2 and t * D <= 2048]
    pool = good if good else cands
    return max(pool)


def mixer_head_forward(x, conv_weights, conv_biases, out_w, out_b, *,
                       n_heads, btile=None):
    """x: (B, L, D). conv_weights: (H, L, L, 1). conv_biases: (H, L).
    out_w: (D, D*H) [PyTorch Linear layout]. out_b: (D,). Returns (B, L, D)."""
    B, L, D = x.shape
    H = n_heads
    f32 = jnp.float32

    # ---- batch-invariant weight prep (hoisted out of the kernel) ----
    # Only the LAST conv is used (loop-index reuse in the reference forward()).
    w = conv_weights[-1, :, :, 0].astype(f32)                       # (L, L)
    tril = jnp.tril(jnp.ones((L, L), f32))
    wt = jnp.where(tril > 0, w, 0.0)
    sm = jax.nn.softmax(wt, axis=-2)      # zeros intentionally included (module quirk)
    w_masked = jnp.where(tril > 0, sm, 0.0)                         # (L, L)

    # All heads concatenate the SAME conv output -> out_proj collapses to (D, D).
    # W_sum[d, o] = sum_h out_w[o, h*D + d]
    w_sum = out_w.astype(f32).reshape(D, H, D).sum(axis=1).T        # (D, D)

    # Fold both biases into one (L, D) additive term:
    #   out = (W_masked @ x) @ W_sum + b_conv ⊗ colsum(W_sum) + b_out
    b_conv = conv_biases[-1].astype(f32)                            # (L,)
    bias_full = (b_conv[:, None] * w_sum.sum(axis=0)[None, :]
                 + out_b.astype(f32)[None, :])                      # (L, D)

    # ---- layout plumbing: token axis -> sublanes, batch*feature -> lanes ----
    if btile is None:
        btile = _pick_btile(B, D)
    assert B % btile == 0
    n_blocks = B // btile
    lane = btile * D

    xT = jnp.transpose(x, (1, 0, 2)).reshape(L, B * D).astype(jnp.bfloat16)
    w_conv_bf = w_masked.astype(jnp.bfloat16)
    # Block-diagonal out-proj weight: per-batch (L, D) @ (D, D) becomes one
    # (L, lane) @ (lane, lane) MXU matmul. Batch-invariant, stays resident.
    w_blk = jnp.kron(jnp.eye(btile, dtype=f32), w_sum).astype(jnp.bfloat16)
    bias_tiled = jnp.tile(bias_full, (1, btile))                    # (L, lane) f32

    out_t = pl.pallas_call(
        mixer_head_kernel,
        out_shape=jax.ShapeDtypeStruct((L, B * D), x.dtype),
        grid_spec=pltpu.PrefetchScalarGridSpec(
            num_scalar_prefetch=0,
            grid=(n_blocks,),
            in_specs=[
                # x stream: only input whose block index changes per step.
                # (If xprof ever shows exposed DMA for very long grids, add
                #  pipeline_mode=pl.Buffered(3) here.)
                pl.BlockSpec((L, lane), lambda b: (0, b)),
                pl.BlockSpec((L, L), lambda b: (0, 0)),
                pl.BlockSpec((lane, lane), lambda b: (0, 0)),
                pl.BlockSpec((L, lane), lambda b: (0, 0)),
            ],
            out_specs=pl.BlockSpec((L, lane), lambda b: (0, b)),
        ),
        compiler_params=pltpu.CompilerParams(
            dimension_semantics=("parallel",)),
    )(xT, w_conv_bf, w_blk, bias_tiled)

    # Back to the module's (B, L, D) layout.
    return jnp.transpose(out_t.reshape(L, B, D), (1, 0, 2))


def mixer_head_reference(x, conv_weights, conv_biases, out_w, out_b, *, n_heads):
    """Pure-JAX f32 reference mirroring the PyTorch forward (for validation)."""
    L = conv_weights.shape[1]
    tril = jnp.tril(jnp.ones((L, L), jnp.float32))
    w = conv_weights[-1, :, :, 0]
    wt = jnp.where(tril > 0, w, 0.0)
    sm = jax.nn.softmax(wt, axis=-2)
    w_masked = jnp.where(tril > 0, sm, 0.0)
    b = conv_biases[-1]
    # Conv1d(k=1): out[b, f, t] = sum_d W[f, d] x[b, d, t] + bias[f]
    y = jnp.einsum('fd,bdt->bft', w_masked, x) + b[None, :, None]
    y_cat = jnp.concatenate([y] * n_heads, axis=2)
    return jnp.einsum('blk,ok->blo', y_cat, out_w) + out_b[None, None, :]


if __name__ == "__main__":
    # Small shapes consistent with the module: dim=32, length=16, hidden_dim=16,
    # n_heads=2, batch=8 (batch tiled 4-per-grid-step -> lane width 128, 2 steps).
    B, L, D, HID, H = 8, 16, 32, 16, 2

    key = jax.random.PRNGKey(0)
    k_x, k_cw, k_cb, k_ow, k_ob = jax.random.split(key, 5)

    x = jax.random.normal(k_x, (B, L, D), jnp.float32)

    # Conv1d(length, length, 1) params for each head: weight (L, L, 1), bias (L,)
    conv_weights = 0.1 * jax.random.normal(k_cw, (H, L, L, 1), jnp.float32)
    conv_biases = 0.1 * jax.random.normal(k_cb, (H, L), jnp.float32)

    # out_proj: Linear(dim * n_heads, dim): weight (D, D*H), bias (D,)
    out_w = 0.1 * jax.random.normal(k_ow, (D, D * H), jnp.float32)
    out_b = 0.1 * jax.random.normal(k_ob, (D,), jnp.float32)

    # proj_head Linear(dim, hidden_dim) exists in the module but its output is
    # discarded in forward() (dead code), so it is omitted here.

    fwd = jax.jit(functools.partial(mixer_head_forward, n_heads=H))
    out = jax.block_until_ready(fwd(x, conv_weights, conv_biases, out_w, out_b))

    ref = mixer_head_reference(x, conv_weights, conv_biases, out_w, out_b, n_heads=H)
    assert out.shape == (B, L, D)
    max_err = float(jnp.max(jnp.abs(out - ref)))
    # bf16 MXU operands (f32 accumulation) -> loosened tolerance vs f32 reference.
    assert jnp.allclose(out, ref, atol=5e-2, rtol=5e-2), (
        f"mismatch vs JAX reference (max abs err {max_err})")

    print("KERNEL_OK")
</pallas_src>

<mosaic_0001>
module attributes {stable_mosaic.version = 11 : i64} {
  func.func @mixer_head_kernel(%arg0: i32, %arg1: memref<16x128xbf16, #tpu.memory_space<vmem>>, %arg2: memref<16x16xbf16, #tpu.memory_space<vmem>>, %arg3: memref<128x128xbf16, #tpu.memory_space<vmem>>, %arg4: memref<16x128xf32, #tpu.memory_space<vmem>>, %arg5: memref<16x128xf32, #tpu.memory_space<vmem>>) attributes {dimension_semantics = [#tpu.dimension_semantics<parallel>], iteration_bounds = array<i64: 2>, scalar_prefetch = 0 : i64, scratch_operands = 0 : i64, tpu.core_type = #tpu.core_type<tc>, window_params = [{transform_indices = @transform_0, window_bounds = array<i64: 16, 128>}, {pipeline_mode = #tpu.pipeline_mode<synchronous>, transform_indices = @transform_1, window_bounds = array<i64: 16, 16>}, {pipeline_mode = #tpu.pipeline_mode<synchronous>, transform_indices = @transform_2, window_bounds = array<i64: 128, 128>}, {pipeline_mode = #tpu.pipeline_mode<synchronous>, transform_indices = @transform_3, window_bounds = array<i64: 16, 128>}, {transform_indices = @transform_4, window_bounds = array<i64: 16, 128>}]} {
    %c0 = arith.constant 0 : index
    %c0_0 = arith.constant 0 : index
    %0 = vector.load %arg2[%c0, %c0_0] : memref<16x16xbf16, #tpu.memory_space<vmem>>, vector<16x16xbf16>
    %c0_1 = arith.constant 0 : index
    %c0_2 = arith.constant 0 : index
    %1 = vector.load %arg1[%c0_1, %c0_2] : memref<16x128xbf16, #tpu.memory_space<vmem>>, vector<16x128xbf16>
    %cst = arith.constant dense<0.000000e+00> : vector<16x128xf32>
    %2 = tpu.matmul %0, %1, %cst {dimension_numbers = #tpu.dot_dimension_numbers<[1], [0], [0], [1], [0, 0, 1, 1], [], []>} : vector<16x16xbf16>, vector<16x128xbf16>, vector<16x128xf32> -> vector<16x128xf32>
    %3 = arith.truncf %2 : vector<16x128xf32> to vector<16x128xbf16>
    %c0_3 = arith.constant 0 : index
    %c0_4 = arith.constant 0 : index
    %4 = vector.load %arg3[%c0_3, %c0_4] : memref<128x128xbf16, #tpu.memory_space<vmem>>, vector<128x128xbf16>
    %cst_5 = arith.constant dense<0.000000e+00> : vector<16x128xf32>
    %5 = tpu.matmul %3, %4, %cst_5 {dimension_numbers = #tpu.dot_dimension_numbers<[1], [0], [0], [1], [0, 0, 1, 1], [], []>} : vector<16x128xbf16>, vector<128x128xbf16>, vector<16x128xf32> -> vector<16x128xf32>
    %c0_6 = arith.constant 0 : index
    %c0_7 = arith.constant 0 : index
    %6 = vector.load %arg4[%c0_6, %c0_7] : memref<16x128xf32, #tpu.memory_space<vmem>>, vector<16x128xf32>
    %7 = arith.addf %5, %6 : vector<16x128xf32>
    %c0_8 = arith.constant 0 : index
    %c0_9 = arith.constant 0 : index
    %8 = vector.load %arg5[%c0_8, %c0_9] : memref<16x128xf32, #tpu.memory_space<vmem>>, vector<16x128xf32>
    tpu.vector_store %arg5[%c0_8, %c0_9], %7 {strides = array<i32>} : memref<16x128xf32, #tpu.memory_space<vmem>>, vector<16x128xf32>,
    return
  }
  func.func @transform_0(%arg0: i32) -> (i32, i32) {
    %c0_i32 = arith.constant 0 : i32
    %c0_i32_0 = arith.constant 0 : i32
    return %c0_i32, %arg0 : i32, i32
  }
  func.func @transform_1(%arg0: i32) -> (i32, i32) {
    %c0_i32 = arith.constant 0 : i32
    %c0_i32_0 = arith.constant 0 : i32
    %c0_i32_1 = arith.constant 0 : i32
    return %c0_i32, %c0_i32_0 : i32, i32
  }
  func.func @transform_2(%arg0: i32) -> (i32, i32) {
    %c0_i32 = arith.constant 0 : i32
    %c0_i32_0 = arith.constant 0 : i32
    %c0_i32_1 = arith.constant 0 : i32
    return %c0_i32, %c0_i32_0 : i32, i32
  }
  func.func @transform_3(%arg0: i32) -> (i32, i32) {
    %c0_i32 = arith.constant 0 : i32
    %c0_i32_0 = arith.constant 0 : i32
    %c0_i32_1 = arith.constant 0 : i32
    return %c0_i32, %c0_i32_0 : i32, i32
  }
  func.func @transform_4(%arg0: i32) -> (i32, i32) {
    %c0_i32 = arith.constant 0 : i32
    %c0_i32_0 = arith.constant 0 : i32
    return %c0_i32, %arg0 : i32, i32
  }
}

</mosaic_0001>

<bundles_post_ra>
// kernel: tile.9
= control target key start
LH: loop header
LB: loop body
LE: loop exit
PB: predicated region body
PF: predicated region fallthrough
CT: control target
= control target key end

     0   :  { %vm82_vm0 = vcmask 1047556   ;;  %vm84_vm1 = vcmask 261120   ;;  %s195_s9 = smov 96   ;;  %s196_s14 = smov 32   ;;  %vm103_vm2 = vcmask 1048320   ;;  %vm124_vm3 = vcmask 785920   ;;  %s289_s0 = inlined_call_operand.vmem [shape: f32[16,4,32], index: 0, kind: input, shape index: {}]   ;;  %s290_s1 = inlined_call_operand.vmem [shape: f32[16,128], index: 1, kind: output, shape index: {}]  }
   0x1   :  { %v180_v0 = vld [vmem:[%s289_s0 + $0x1c] sm:$0xf]  ;;  %v181_v1 = vld [vmem:[%s289_s0 + $0x18] sm:$0xf]  ;;  %v182_v2 = vld [vmem:[%s289_s0 + $0x14] sm:$0xf] }
   0x2   :  { %48 = vst [vmem:[#allocation0 + $0x38] sm:$0xf] %v180_v0  ;;  %53 = vst [vmem:[#allocation0 + $0x30] sm:$0xf] %v181_v1  ;;  %v183_v3 = vld [vmem:[%s289_s0 + $0x10] sm:$0xf] }
   0x3   :  { %58 = vst [vmem:[#allocation0 + $0x28] sm:$0xf] %v182_v2  ;;  %v184_v4 = vld [vmem:[%s289_s0 + $0xc] sm:$0xf]  ;;  %v185_v5 = vld [vmem:[%s289_s0 + $0x8] sm:$0xf] }
   0x4   :  { %63 = vst [vmem:[#allocation0 + $0x20] sm:$0xf] %v183_v3  ;;  %68 = vst [vmem:[#allocation0 + $0x18] sm:$0xf] %v184_v4  ;;  %v186_v6 = vld [vmem:[%s289_s0 + $0x4] sm:$0xf] }
   0x5   :  { %73 = vst [vmem:[#allocation0 + $0x10] sm:$0xf] %v185_v5  ;;  %v78_v7 = vld [vmem:[%s289_s0] sm:$0xf]  ;;  %77 = vst [vmem:[#allocation0 + $0x8] sm:$0xf] %v186_v6 }
   0x6   :  { %79 = vst [vmem:[#allocation0] sm:$0xf] %v78_v7  ;;  %v172_v8 = vld [vmem:[%s289_s0 + $0x3c] sm:$0xf]  ;;  %v173_v9 = vld [vmem:[%s289_s0 + $0x38] sm:$0xf] }
   0x7   :  { %8 = vst [vmem:[#allocation0 + $0x78] sm:$0xf] %v172_v8  ;;  %13 = vst [vmem:[#allocation0 + $0x70] sm:$0xf] %v173_v9  ;;  %v174_v10 = vld [vmem:[%s289_s0 + $0x34] sm:$0xf] }
   0x8   :  { %v175_v11 = vld [vmem:[%s289_s0 + $0x30] sm:$0xf]  ;;  %v176_v12 = vld [vmem:[%s289_s0 + $0x2c] sm:$0xf]  ;;  %18 = vst [vmem:[#allocation0 + $0x68] sm:$0xf] %v174_v10 }
   0x9   :  { %23 = vst [vmem:[#allocation0 + $0x60] sm:$0xf] %v175_v11  ;;  %28 = vst [vmem:[#allocation0 + $0x58] sm:$0xf] %v176_v12  ;;  %v177_v13 = vld [vmem:[%s289_s0 + $0x28] sm:$0xf] }
   0xa   :  { %v178_v14 = vld [vmem:[%s289_s0 + $0x24] sm:$0xf]  ;;  %v179_v15 = vld [vmem:[%s289_s0 + $0x20] sm:$0xf]  ;;  %33 = vst [vmem:[#allocation0 + $0x50] sm:$0xf] %v177_v13 }
   0xb   :  { %38 = vst [vmem:[#allocation0 + $0x48] sm:$0xf] %v178_v14  ;;  %43 = vst [vmem:[#allocation0 + $0x40] sm:$0xf] %v179_v15  ;;  %s194_s0 = smov 64   ;;  %vm145_vm4 = vcmask 523520  }
   0xc   :  { %v119_v16 = vld [vmem:[#allocation0 + $0x2] ss:$8 sm:$0xf0]   ;;  %v98_v17 = vld [vmem:[#allocation0 + $0x3] ss:$8 sm:$0xf0]  }
   0xd   :  { %v117_v18 = vld [vmem:[#allocation0 + $0x2] ss:$8 sm:$0xf]   ;;  %v96_v19 = vld [vmem:[#allocation0 + $0x3] ss:$8 sm:$0xf]  }
   0xe   :  { %v121_v20 = vsel %vm82_vm0, %v119_v16, %v117_v18  ;;  %v100_v21 = vsel %vm82_vm0, %v98_v17, %v96_v19  ;;  %v138_v24 = vld [vmem:[#allocation0 + $0x1] ss:$8 sm:$0xf]   ;;  %v80_v32 = vld [vmem:[#allocation0] ss:$8 sm:$0xf]  }
   0xf   :  { %122 = vrot.lane.b32.xlu1 %v121_v20, %s194_s0  ;;  %101 = vrot.lane.b32.xlu0 %v100_v21, %s195_s9  ;;  %v140_v25 = vld [vmem:[#allocation0 + $0x1] ss:$8 sm:$0xf0]   ;;  %v81_v33 = vld [vmem:[#allocation0] ss:$8 sm:$0xf0]  }
  0x10   :  { %v129_v22 = vld [vmem:[#allocation0 + $0x42] ss:$8 sm:$0xf0]   ;;  %v108_v23 = vld [vmem:[#allocation0 + $0x43] ss:$8 sm:$0xf0]   ;;  %v83_v34 = vsel %vm82_vm0, %v81_v33, %v80_v32  ;;  %v142_v38 = vsel %vm82_vm0, %v140_v25, %v138_v24 }
  0x11   :  { %v150_v31 = vld [vmem:[#allocation0 + $0x41] ss:$8 sm:$0xf0]   ;;  %v89_v36 = vld [vmem:[#allocation0 + $0x40] ss:$8 sm:$0xf0]  }
  0x12   :  { %v127_v26 = vld [vmem:[#allocation0 + $0x42] ss:$8 sm:$0xf]   ;;  %v106_v27 = vld [vmem:[#allocation0 + $0x43] ss:$8 sm:$0xf]  }
  0x13   :  { %v131_v28 = vsel %vm82_vm0, %v129_v22, %v127_v26  ;;  %v110_v29 = vsel %vm82_vm0, %v108_v23, %v106_v27  ;;  %v148_v30 = vld [vmem:[#allocation0 + $0x41] ss:$8 sm:$0xf]   ;;  %v87_v35 = vld [vmem:[#allocation0 + $0x40] ss:$8 sm:$0xf]  }
  0x14   :  { %132 = vrot.lane.b32.xlu1 %v131_v28, %s194_s0  ;;  %111 = vrot.lane.b32.xlu0 %v110_v29, %s195_s9  ;;  %v152_v37 = vsel %vm82_vm0, %v150_v31, %v148_v30  ;;  %85 = vst.msk [vmem:[%s290_s1] sm:$0xff] %vm84_vm1, %v83_v34   ;;  %v91_v39 = vsel %vm82_vm0, %v89_v36, %v87_v35 }
  0x15   :  { %187 = vst.msk [vmem:[%s290_s1 + $0x8] sm:$0xff] %vm84_vm1, %v91_v39  }
  0x18   :  { %153 = vrot.lane.b32.xlu1 %v152_v37, %s196_s14  ;;  %143 = vrot.lane.b32.xlu0 %v142_v38, %s196_s14 }
  0x81   :  { %v123_v40 = vpop.permute.xlu1 %122   ;;  %v102_v41 = vpop.permute.xlu0 %101  }
  0x82   :  { %104 = vst.msk [vmem:[%s290_s1] sm:$0xff] %vm103_vm2, %v102_v41  }
  0x83   :  { %125 = vst.msk [vmem:[%s290_s1] sm:$0xff] %vm124_vm3, %v123_v40  }
  0x86   :  { %v133_v42 = vpop.permute.xlu1 %132   ;;  %v112_v43 = vpop.permute.xlu0 %111  }
  0x87   :  { %188 = vst.msk [vmem:[%s290_s1 + $0x8] sm:$0xff] %vm103_vm2, %v112_v43  }
  0x88   :  { %189 = vst.msk [vmem:[%s290_s1 + $0x8] sm:$0xff] %vm124_vm3, %v133_v42  }
  0x8a   :  { %v154_v44 = vpop.permute.xlu1 %153   ;;  %v144_v45 = vpop.permute.xlu0 %143  }
  0x8b   :  { %190 = vst.msk [vmem:[%s290_s1 + $0x8] sm:$0xff] %vm145_vm4, %v154_v44   ;;  %146 = vst.msk [vmem:[%s290_s1] sm:$0xff] %vm145_vm4, %v144_v45  }

// kernel: mixer_head_forward.1
= control target key start
LH: loop header
LB: loop body
LE: loop exit
PB: predicated region body
PF: predicated region fallthrough
CT: control target
= control target key end

     0   :  { %s657_s15 = smov 0   ;;  %s659_s16 = smov 0   ;;  %s754_s0 = inlined_call_operand.vmem [shape: bf16[16,256], index: 0, kind: input, shape index: {}]   ;;  %s755_s1 = inlined_call_operand.vmem [shape: bf16[16,16], index: 1, kind: input, shape index: {}]   ;;  %s756_s2 = inlined_call_operand.vmem [shape: bf16[128,128], index: 2, kind: input, shape index: {}]   ;;  %s757_s3 = inlined_call_operand.vmem [shape: f32[16,128], index: 3, kind: input, shape index: {}]   ;;  %s758_s4 = inlined_call_operand.vmem [shape: f32[16,256], index: 4, kind: output, shape index: {}]  }
   0x1   :  { %s661_s17 = smov 0  }
   0x2 LB: > { %s509_s18 = sadd.s32 4294967295, %s628_s17   ;;  %s674_s19 = sadd.s32 1, %s628_s17   ;;  %s628_s17 = sphi %s661_s17, %s762_s17   ;;  %s624_s16 = sphi %s659_s16, %s761_s16   ;;  %s620_s15 = sphi %s657_s15, %s760_s15  }
   0x3   : > { %s18_s20 = ssub.s32 %s628_s17, %s674_s19  ;;  %s21_s21 = sadd.s32 1, %s624_s16 }
   0x4   : > { %p19_p0 = scmp.eq.s32.totalorder %s18_s20, 0  ;;  %p28_p1 = scmp.ne.s32.totalorder %s624_s16, %s620_s15 }
   0x5   : > { %p29_p2 = scmp.eq.s32.totalorder %s628_s17, 0  ;;  %p121_p3 = scmp.eq.s32.totalorder %s509_s18, 1 }
   0x6   : > { %s685_s22 = scalar_select %p19_p0, %s624_s16, %s21_s21  }
   0x7   : > { %p30_p4 = por %p29_p2, %p28_p1  ;;  %p687_p5 = por %p121_p3, %p28_p1 }
   0x8   : > { %p512_p6 = scmp.ge.s32.totalorder %s628_s17, 2 }
   0xa   : > { %152 = sbr.rel (%p512_p6) target bundleno = 24 (0x18), region = 28 }
  0x11   : > { %155 = sbr.rel (!%p30_p4) target bundleno = 24 (0x18), region = 32  ;;  %s157_s24 = sand.u32 (%p30_p4), 1, %s624_s16  }
  0x12   : > { %s514_s25 = sshll.u32 (%p30_p4), %s628_s17, 2  ;;  %s513_s26 = sshll.u32 (%p30_p4), %s157_s24, 3 }
  0x13   : > { %s161_s29 = scalar_lea.vmem (%p30_p4), %s754_s0, %s514_s25  ;;  %s159_s30 = scalar_lea.vmem (%p30_p4), [#allocation2], %s513_s26 }
  0x14   : > { %v177_v0 = vld [vmem:[%s161_s29] sm:$0xf] (%p30_p4)  ;;  %v179_v1 = vld [vmem:[%s161_s29 + $0x8] sm:$0xf] (%p30_p4) }
  0x15   : > { %178 = vst [vmem:[%s159_s30] sm:$0xf] (%p30_p4), %v177_v0  ;;  %180 = vst [vmem:[%s159_s30 + $0x4] sm:$0xf] (%p30_p4), %v179_v1 }
  0x18 PF: > { %p515_p7 = scmp.ge.s32.totalorder %s628_s17, 1  ;;  %p206_p8 = scmp.lt.s32.totalorder %s628_s17, 3 }
  0x1a   : > { %p207_p9 = pnand %p515_p7, %p206_p8 }
  0x1b   : > { %s213_s5 = sand.u32 (!%p207_p9), 1, %s620_s15   ;;  %v630_v2 = vmov (!%p207_p9), 0.0   ;;  %vm631_vm0 = vmmov (!%p207_p9), 0   ;;  %v597_v3 = vld [vmem:[%s755_s1] sm:$0xff] (!%p207_p9)   ;;  %v599_v6 = vld [vmem:[%s756_s2 + $0x8] sm:$0xff] (!%p207_p9)   ;;  %vm253_vm1 = vcmask (!%p207_p9), 130048  }
  0x1c   : > { %210 = sbr.rel (%p207_p9) target bundleno = 475 (0x1db), region = 73  ;;  %544 = vmatprep.subr.bf16.mxu0 (!%p207_p9), %v630_v2  ;;  %s516_s6 = sshll.u32 (!%p207_p9), %s213_s5, 3  ;;  %546 = vmatprep.mubr.msk.bf16.mxu0 (!%p207_p9), %vm631_vm0, %v630_v2  ;;  %v598_v4 = vld [vmem:[%s756_s2] sm:$0xff] (!%p207_p9)   ;;  %v600_v7 = vld [vmem:[%s756_s2 + $0x10] sm:$0xff] (!%p207_p9)   ;;  %v601_v8 = vld [vmem:[%s756_s2 + $0x18] sm:$0xff] (!%p207_p9)  }
  0x1d   : > { %550 = vmatprep.subr.bf16.mxu1 (!%p207_p9), %v630_v2  ;;  %566 = vmatprep.mubr.msk.bf16.mxu1 (!%p207_p9), %vm631_vm0, %v630_v2  ;;  %s215_s11 = scalar_lea.vmem (!%p207_p9), [#allocation2], %s516_s6  ;;  %v602_v9 = vld [vmem:[%s756_s2 + $0x20] sm:$0xff] (!%p207_p9)   ;;  %v603_v10 = vld [vmem:[%s756_s2 + $0x28] sm:$0xff] (!%p207_p9)   ;;  %v604_v11 = vld [vmem:[%s756_s2 + $0x30] sm:$0xff] (!%p207_p9)   ;;  %s517_s8 = sshll.u32 (!%p207_p9), %s213_s5, 4 }
  0x1e   : > { %v596_v5 = vld [vmem:[%s215_s11] sm:$0xff] (!%p207_p9)   ;;  %551 = vmatpush3.bf16.msra.mxu1 (!%p207_p9), %v598_v4  ;;  %v605_v12 = vld [vmem:[%s756_s2 + $0x38] sm:$0xff] (!%p207_p9)   ;;  %s236_s13 = scalar_lea.vmem (!%p207_p9), [#allocation3], %s517_s8 }
  0x1f   : > { %545 = vmatpush3.bf16.msra.mxu0 (!%p207_p9), %v596_v5  ;;  %552 = vmatprep.subr.bf16.mxu1 (!%p207_p9), %v630_v2  ;;  %v315_v18 = vld [vmem:[%s757_s3] sm:$0xff] (!%p207_p9)  ;;  %v316_v20 = vld [vmem:[%s757_s3 + $0x8] sm:$0xff] (!%p207_p9) }
  0x22   : > { %547 = vmatmul.mubr.msk.bf16.vlgmr.msra.gmra.mrb[0].mxu0 (!%p207_p9), %vm253_vm1, %v597_v3  ;;  %553 = vmatpush3.bf16.msra.mxu1 (!%p207_p9), %v599_v6 }
  0x23   : > { %554 = vmatprep.subr.bf16.mxu1 %v630_v2  ;;  %s530_s15 = sshll.u32 (%p687_p5), %s509_s18, 3 }
  0x24   : > { %s416_s20 = scalar_lea.vmem (%p687_p5), %s758_s4, %s530_s15 }
  0x26   : > { %555 = vmatpush3.bf16.msra.mxu1 %v600_v7 }
  0x27   : > { %556 = vmatprep.subr.bf16.mxu1 %v630_v2 }
  0x2a   : > { %557 = vmatpush3.bf16.msra.mxu1 %v601_v8 }
  0x2b   : > { %558 = vmatprep.subr.bf16.mxu1 %v630_v2 }
  0x2e   : > { %559 = vmatpush3.bf16.msra.mxu1 %v602_v9 }
  0x2f   : > { %560 = vmatprep.subr.bf16.mxu1 %v630_v2 }
  0x32   : > { %561 = vmatpush3.bf16.msra.mxu1 %v603_v10 }
  0x33   : > { %562 = vmatprep.subr.bf16.mxu1 %v630_v2 }
  0x36   : > { %563 = vmatpush3.bf16.msra.mxu1 %v604_v11 }
  0x37   : > { %564 = vmatprep.subr.bf16.mxu1 %v630_v2 }
  0x3a   : > { %565 = vmatpush3.bf16.msra.mxu1 %v605_v12 }
  0xf5   : > { %v291_v13 = vpop.f32.mrb[0].mxu0 }
  0xf6   : > { %v548_v14 = vpop.f32.mrb[1].mxu0 }
  0xf7   : > { %v294_v15 = vpop.f32.mrb[2].mxu0 }
  0xf8   : > { %v298_v16 = vpack.c.bf16 %v294_v15, %v291_v13  ;;  %v549_v17 = vpop.f32.mrb[3].mxu0 }
  0xfa   : > { %567 = vmatmul.mubr.bf16.vlgmr.msra.gmra.mrb[0].mxu1 %v298_v16 }
 0x1cc   : > { %414 = sbr.rel (!%p687_p5) target bundleno = 475 (0x1db), region = 81 }
 0x1cd   : > { %v399_v19 = vpop.f32.mrb[0].mxu1 }
 0x1ce   : > { %v400_v21 = vadd.f32 %v399_v19, %v315_v18  ;;  %v568_v22 = vpop.f32.mrb[1].mxu1 }
 0x1cf   : > { %v402_v23 = vpop.f32.mrb[2].mxu1 }
 0x1d0   : > { %406 = vst [vmem:[%s236_s13] sm:$0xff] %v400_v21  ;;  %v403_v24 = vadd.f32 %v402_v23, %v316_v20  ;;  %v569_v25 = vpop.f32.mrb[3].mxu1 }
 0x1d2   : > { %407 = vst [vmem:[%s236_s13 + $0x8] sm:$0xff] %v403_v24 }
 0x1d7   : > { %v446_v26 = vld [vmem:[%s236_s13] sm:$0xff] }
 0x1d8   : > { %447 = vst [vmem:[%s416_s20] sm:$0xff] %v446_v26 }
 0x1d9   : > { %v448_v27 = vld [vmem:[%s236_s13 + $0x8] sm:$0xff] }
 0x1da   : > { %449 = vst [vmem:[%s416_s20 + $0x10] sm:$0xff] %v448_v27 }
 0x1db PF: > { %p11_p10 = scmp.ge.s32.totalorder %s674_s19, 4   ;;  %s760_s15 = smov %s624_s16 }
 0x1dc   : > { %s761_s16 = smov %s685_s22  ;;  %s762_s17 = smov %s674_s19 }
 0x1dd   :  { %13 = sbr.rel (!%p11_p10) target bundleno = 2 (0x2), region = 150 }

</bundles_post_ra>
